<compile_context>
chip_gen: v6e
topology: v6e:2x2x1
jax: 0.10.0
libtpu: 0.0.40
codegen_flags: <defaults>
</compile_context>

<pallas_src>
import functools

import jax
import jax.numpy as jnp
from jax import lax
from jax.experimental import pallas as pl
from jax.experimental.pallas import tpu as pltpu


# --------------------------------------------------------------------------------------
# small in-kernel helpers
# --------------------------------------------------------------------------------------

def _stable_sigmoid(g):
    """sigmoid without an inf intermediate for very negative logits."""
    pos = g >= 0.0
    z = jnp.exp(jnp.where(pos, -g, g))        # exp of a non-positive value
    inv = 1.0 / (1.0 + z)
    return jnp.where(pos, inv, z * inv)


def _fc_gate(mean, w1_ref, b1_ref, w2_ref, b2_ref, use_mxu_fc):
    """FC1 -> ReLU -> FC2 -> sigmoid applied to the (C, 1) per-channel mean column.

    use_mxu_fc=True : w1_ref is (CMID, C), b1_ref is (CMID, 1)  -- weights stream
                      through the MXU (matrix @ column vector), no big vreg operands.
    use_mxu_fc=False: w1_ref is (C, CMID), b1_ref is (1, CMID)  -- tiny-channel path,
                      broadcast-multiply + sublane/lane reduce (no degenerate matmuls).
    w2_ref is always (C, CMID), b2_ref is (C, 1).
    """
    if use_mxu_fc:
        h = jnp.dot(w1_ref[...], mean, preferred_element_type=jnp.float32) + b1_ref[...]
        h = jnp.maximum(h, 0.0)                                        # (CMID, 1)
        g = jnp.dot(w2_ref[...], h, preferred_element_type=jnp.float32) + b2_ref[...]
    else:
        h = jnp.sum(w1_ref[...] * mean, axis=0, keepdims=True) + b1_ref[...]   # (1, CMID)
        h = jnp.maximum(h, 0.0)
        g = jnp.sum(w2_ref[...] * h, axis=-1, keepdims=True) + b2_ref[...]     # (C, 1)
    return _stable_sigmoid(g)                                                   # (C, 1) f32


def _lane_strip_sum(x_ref, C, width):
    """Per-channel sum over a (1, C, width) ref window using a lane-wide f32 accumulator.

    128-wide strips are added on the VPU; only the final (C, 128) -> (C, 1) reduce hits
    the XLU, instead of one cross-lane reduce per vreg row.
    """
    nstrips = width // 128

    def body(k, acc):
        off = pl.multiple_of(k * 128, 128)
        return acc + x_ref[0, :, pl.ds(off, 128)].astype(jnp.float32)

    acc = lax.fori_loop(0, nstrips, body, jnp.zeros((C, 128), jnp.float32),
                        unroll=nstrips <= 8)
    return jnp.sum(acc, axis=-1, keepdims=True)                        # (C, 1)


# --------------------------------------------------------------------------------------
# fused single-pass kernel (primary path)
# --------------------------------------------------------------------------------------

def _se_fused_kernel(x_ref, w1_ref, b1_ref, w2_ref, b2_ref, o_ref, *, inv_hw, use_mxu_fc):
    """One batch element fully resident: pool + gate + scale; x read from HBM once.

    x_ref / o_ref : (1, C, HW)
    """
    C, HW = x_ref.shape[1], x_ref.shape[2]

    # --- global average pool ---
    if HW % 128 == 0 and HW >= 256:
        s = _lane_strip_sum(x_ref, C, HW)                              # VALU strips + 1 XLU reduce
    else:
        s = jnp.sum(x_ref[0].astype(jnp.float32), axis=-1, keepdims=True)
    mean = s * inv_hw                                                  # (C, 1) f32

    # --- squeeze / excite gate ---
    gate = _fc_gate(mean, w1_ref, b1_ref, w2_ref, b2_ref, use_mxu_fc)  # (C, 1) f32

    # --- scale (resident slab, no second HBM read of x) ---
    gate = gate.astype(x_ref.dtype)      # bf16 inputs multiply in bf16 (v6e/v7x VPU)
    o_ref[...] = (x_ref[...] * gate[None]).astype(o_ref.dtype)


# --------------------------------------------------------------------------------------
# two-pass fallback kernels (slab too large for VMEM)
# --------------------------------------------------------------------------------------

def _se_pool_gate_kernel(x_ref, w1_ref, b1_ref, w2_ref, b2_ref, gate_ref, acc_ref,
                         *, inv_hw, use_mxu_fc, lane_acc):
    """Streamed global-average-pool + FC gate.

    x_ref   : (1, C, TP)  spatial tile of one batch element
    gate_ref: (1, C, 1)
    acc_ref : (C, 128) f32 if lane_acc else (C, 1) f32 -- running partial sums
    """
    t = pl.program_id(1)

    @pl.when(t == 0)
    def _():
        acc_ref[...] = jnp.zeros_like(acc_ref)

    if lane_acc:
        # Keep the per-tile accumulation on the VALU (acc is lane-wide); the single
        # cross-lane reduce happens only once, on the last tile.
        acc_ref[...] += _strip_partial(x_ref)
    else:
        acc_ref[...] += jnp.sum(x_ref[0].astype(jnp.float32), axis=-1, keepdims=True)

    @pl.when(t == pl.num_programs(1) - 1)
    def _():
        s = jnp.sum(acc_ref[...], axis=-1, keepdims=True) if lane_acc else acc_ref[...]
        mean = s * inv_hw                                              # (C, 1)
        gate = _fc_gate(mean, w1_ref, b1_ref, w2_ref, b2_ref, use_mxu_fc)
        gate_ref[...] = gate[None].astype(gate_ref.dtype)


def _strip_partial(x_ref):
    """(1, C, TP) ref -> (C, 128) f32 partial sum via VPU adds over 128-wide strips."""
    C, TP = x_ref.shape[1], x_ref.shape[2]
    nstrips = TP // 128

    def body(k, acc):
        off = pl.multiple_of(k * 128, 128)
        return acc + x_ref[0, :, pl.ds(off, 128)].astype(jnp.float32)

    return lax.fori_loop(0, nstrips, body, jnp.zeros((C, 128), jnp.float32),
                         unroll=nstrips <= 8)


def _se_scale_kernel(x_ref, gate_ref, o_ref):
    """out = x * gate, gate broadcast across the lane (pixel) axis.

    x_ref/o_ref: (1, C, TP); gate_ref: (1, C, 1) f32.
    """
    o_ref[...] = (x_ref[...] * gate_ref[...].astype(x_ref.dtype)).astype(o_ref.dtype)


# --------------------------------------------------------------------------------------
# wrapper
# --------------------------------------------------------------------------------------

def _vmem_limit_bytes():
    """Generation-aware scoped-VMEM request (v5e/v6e: 128 MiB phys, v7x: 64 MiB)."""
    try:
        cap = int(pltpu.get_tpu_info().vmem_capacity_bytes)
    except Exception:
        cap = 64 << 20                     # conservative (v7x-sized) default
    return min((cap * 3) // 4, 100 << 20)  # ~96 MiB on v5e/v6e, ~48 MiB on v7x


def _pick_pixel_tile(hw, c, itemsize, block_budget_bytes):
    """Largest legal spatial tile (multiple of 128 dividing HW, or HW itself) whose
    scale-pass footprint (~2x in + 2x out double-buffered blocks) fits the budget."""
    cands = [d for d in range(128, hw, 128) if hw % d == 0] + [hw]
    cap = max(128, block_budget_bytes // (4 * c * itemsize))
    fitting = [d for d in cands if d <= cap]
    return max(fitting) if fitting else min(cands)


def se_module_pallas(x_nchw, w1_oihw, b1, w2_oihw, b2, *,
                     force_two_pass=False, tile_override=None):
    """x: (N, C, H, W); w1: (CMID, C, 1, 1); b1: (CMID,); w2: (C, CMID, 1, 1); b2: (C,)."""
    N, C, H, W = x_nchw.shape
    CMID = w1_oihw.shape[0]
    HW = H * W
    itemsize = x_nchw.dtype.itemsize
    inv_hw = 1.0 / float(HW)

    x_flat = x_nchw.reshape(N, C, HW)      # NCHW kept; free reshape

    vmem_limit = _vmem_limit_bytes()

    def cparams(sem):
        return pltpu.CompilerParams(dimension_semantics=sem, vmem_limit_bytes=vmem_limit)
    # TODO(synk): on v7x, verify the batch axis actually shards across both TensorCores;
    # if not, switch the batch grid axis to pltpu.CORE_PARALLEL (conditional on chip).

    # 1x1-conv parameters, laid out for the chosen FC formulation.
    use_mxu_fc = (C * CMID) >= 128 * 128   # big weights -> MXU; tiny -> broadcast+reduce
    if use_mxu_fc:
        w1k = w1_oihw.reshape(CMID, C).astype(jnp.float32)                    # (CMID, C)
        b1k = b1.reshape(CMID, 1).astype(jnp.float32)                         # (CMID, 1)
    else:
        w1k = jnp.transpose(w1_oihw.reshape(CMID, C)).astype(jnp.float32)     # (C, CMID)
        b1k = b1.reshape(1, CMID).astype(jnp.float32)                         # (1, CMID)
    w2k = w2_oihw.reshape(C, CMID).astype(jnp.float32)                        # (C, CMID)
    b2k = b2.reshape(C, 1).astype(jnp.float32)                                # (C, 1)
    param_bytes = 4 * (w1k.size + b1k.size + w2k.size + b2k.size)

    # ---------------- fused single-pass path ----------------
    # Per-grid-step footprint: x block + out block, both double-buffered, plus weights.
    fused_bytes = 4 * C * HW * itemsize + 2 * param_bytes + (2 << 20)
    if (not force_two_pass) and fused_bytes <= int(vmem_limit * 0.85):
        def w_spec(shape):
            return pl.BlockSpec(shape, lambda n: (0,) * len(shape))

        out_flat = pl.pallas_call(
            functools.partial(_se_fused_kernel, inv_hw=inv_hw, use_mxu_fc=use_mxu_fc),
            out_shape=jax.ShapeDtypeStruct((N, C, HW), x_nchw.dtype),
            grid_spec=pltpu.PrefetchScalarGridSpec(
                num_scalar_prefetch=0,
                grid=(N,),
                in_specs=[
                    pl.BlockSpec((1, C, HW), lambda n: (n, 0, 0)),
                    w_spec(w1k.shape), w_spec(b1k.shape),
                    w_spec(w2k.shape), w_spec(b2k.shape),
                ],
                out_specs=pl.BlockSpec((1, C, HW), lambda n: (n, 0, 0)),
            ),
            compiler_params=cparams(("parallel",)),
        )(x_flat, w1k, b1k, w2k, b2k)
        return out_flat.reshape(N, C, H, W)

    # ---------------- two-pass fallback (slab exceeds VMEM budget) ----------------
    # TODO(synk): replace with a single grid=(N,) kernel that manually double-buffers x
    # tiles from HBM (memory_space=pl.ANY) through the pool pass and again through the
    # scale pass, keeping the gate in VMEM, so x is still only read once.
    block_budget = int(vmem_limit * 0.7)
    TP = tile_override if tile_override is not None else _pick_pixel_tile(
        HW, C, itemsize, block_budget)
    assert HW % TP == 0, "spatial tile must divide H*W"
    num_tiles = HW // TP
    lane_acc = (TP % 128 == 0)
    acc_shape = (C, 128) if lane_acc else (C, 1)

    def w_spec2(shape):
        return pl.BlockSpec(shape, lambda n, t: (0,) * len(shape))

    # pass 1: pooled per-channel gate, (N, C, 1)
    gate = pl.pallas_call(
        functools.partial(_se_pool_gate_kernel, inv_hw=inv_hw,
                          use_mxu_fc=use_mxu_fc, lane_acc=lane_acc),
        out_shape=jax.ShapeDtypeStruct((N, C, 1), jnp.float32),
        grid_spec=pltpu.PrefetchScalarGridSpec(
            num_scalar_prefetch=0,
            grid=(N, num_tiles),
            in_specs=[
                pl.BlockSpec((1, C, TP), lambda n, t: (n, 0, t)),
                w_spec2(w1k.shape), w_spec2(b1k.shape),
                w_spec2(w2k.shape), w_spec2(b2k.shape),
            ],
            out_specs=pl.BlockSpec((1, C, 1), lambda n, t: (n, 0, 0)),
            scratch_shapes=[pltpu.VMEM(acc_shape, jnp.float32)],
        ),
        compiler_params=cparams(("parallel", "arbitrary")),
    )(x_flat, w1k, b1k, w2k, b2k)

    # pass 2: elementwise scale
    out_flat = pl.pallas_call(
        _se_scale_kernel,
        out_shape=jax.ShapeDtypeStruct((N, C, HW), x_nchw.dtype),
        grid_spec=pltpu.PrefetchScalarGridSpec(
            num_scalar_prefetch=0,
            grid=(N, num_tiles),
            in_specs=[
                pl.BlockSpec((1, C, TP), lambda n, t: (n, 0, t)),
                pl.BlockSpec((1, C, 1), lambda n, t: (n, 0, 0)),
            ],
            out_specs=pl.BlockSpec((1, C, TP), lambda n, t: (n, 0, t)),
        ),
        compiler_params=cparams(("parallel", "parallel")),
    )(x_flat, gate)

    return out_flat.reshape(N, C, H, W)


# --------------------------------------------------------------------------------------
# pure-JAX reference (mirrors the PyTorch forward)
# --------------------------------------------------------------------------------------

def se_module_reference(x, w1, b1, w2, b2):
    dn = ("NCHW", "OIHW", "NCHW")
    pooled = jnp.mean(x, axis=(2, 3), keepdims=True)                           # (N, C, 1, 1)
    h = lax.conv_general_dilated(pooled, w1, (1, 1), "VALID", dimension_numbers=dn)
    h = h + b1[None, :, None, None]
    h = jnp.maximum(h, 0.0)
    g = lax.conv_general_dilated(h, w2, (1, 1), "VALID", dimension_numbers=dn)
    g = g + b2[None, :, None, None]
    g = jax.nn.sigmoid(g)
    return x * g


if __name__ == "__main__":
    def make_inputs(key, N, C, H, W, compress_rate):
        CMID = C // compress_rate
        kx, kw1, kb1, kw2, kb2 = jax.random.split(key, 5)
        x = jax.random.normal(kx, (N, C, H, W), dtype=jnp.float32)
        w1 = jax.random.normal(kw1, (CMID, C, 1, 1), dtype=jnp.float32) * (1.0 / C) ** 0.5
        b1 = jax.random.normal(kb1, (CMID,), dtype=jnp.float32) * 0.1
        w2 = jax.random.normal(kw2, (C, CMID, 1, 1), dtype=jnp.float32) * (1.0 / CMID) ** 0.5
        b2 = jax.random.normal(kb2, (C,), dtype=jnp.float32) * 0.1
        return x, w1, b1, w2, b2

    # 1) fused single-pass path (whole per-batch slab resident in VMEM)
    x, w1, b1, w2, b2 = make_inputs(jax.random.PRNGKey(0), 2, 4, 16, 16, 2)
    out = jax.block_until_ready(se_module_pallas(x, w1, b1, w2, b2))
    ref = jax.block_until_ready(se_module_reference(x, w1, b1, w2, b2))
    assert out.shape == x.shape
    assert jnp.allclose(out, ref, atol=1e-4, rtol=1e-4), "fused path mismatch vs reference"

    # 2) streamed two-pass fallback (forced, small tile -> exercises accumulator path)
    x2, w12, b12, w22, b22 = make_inputs(jax.random.PRNGKey(1), 2, 8, 16, 16, 2)
    out2 = jax.block_until_ready(
        se_module_pallas(x2, w12, b12, w22, b22, force_two_pass=True, tile_override=128))
    ref2 = jax.block_until_ready(se_module_reference(x2, w12, b12, w22, b22))
    assert jnp.allclose(out2, ref2, atol=1e-4, rtol=1e-4), "two-pass path mismatch vs reference"

    print("KERNEL_OK")
</pallas_src>

<mosaic_0001>
module attributes {stable_mosaic.version = 11 : i64} {
  func.func @_se_fused_kernel(%arg0: i32, %arg1: memref<1x4x256xf32, #tpu.memory_space<vmem>>, %arg2: memref<4x2xf32, #tpu.memory_space<vmem>>, %arg3: memref<1x2xf32, #tpu.memory_space<vmem>>, %arg4: memref<4x2xf32, #tpu.memory_space<vmem>>, %arg5: memref<4x1xf32, #tpu.memory_space<vmem>>, %arg6: memref<1x4x256xf32, #tpu.memory_space<vmem>>) attributes {dimension_semantics = [#tpu.dimension_semantics<parallel>], iteration_bounds = array<i64: 2>, scalar_prefetch = 0 : i64, scratch_operands = 0 : i64, tpu.core_type = #tpu.core_type<tc>, window_params = [{transform_indices = @transform_0, window_bounds = array<i64: 1, 4, 256>}, {pipeline_mode = #tpu.pipeline_mode<synchronous>, transform_indices = @transform_1, window_bounds = array<i64: 4, 2>}, {pipeline_mode = #tpu.pipeline_mode<synchronous>, transform_indices = @transform_2, window_bounds = array<i64: 1, 2>}, {pipeline_mode = #tpu.pipeline_mode<synchronous>, transform_indices = @transform_3, window_bounds = array<i64: 4, 2>}, {pipeline_mode = #tpu.pipeline_mode<synchronous>, transform_indices = @transform_4, window_bounds = array<i64: 4, 1>}, {transform_indices = @transform_5, window_bounds = array<i64: 1, 4, 256>}]} {
    %cst = arith.constant 0.000000e+00 : f32
    %0 = vector.broadcast %cst : f32 to vector<4x128xf32>
    %c0_i32 = arith.constant 0 : i32
    %c128_i32 = arith.constant 128 : i32
    %1 = arith.muli %c0_i32, %c128_i32 : i32
    %2 = tpu.assume_multiple %1, 128 : i32
    %c0 = arith.constant 0 : index
    %c0_0 = arith.constant 0 : index
    %3 = arith.index_cast %2 : i32 to index
    %4 = vector.load %arg1[%c0, %c0_0, %3] : memref<1x4x256xf32, #tpu.memory_space<vmem>>, vector<1x4x128xf32>
    %5 = vector.shape_cast %4 : vector<1x4x128xf32> to vector<4x128xf32>
    %6 = arith.addf %0, %5 : vector<4x128xf32>
    %c1_i32 = arith.constant 1 : i32
    %c128_i32_1 = arith.constant 128 : i32
    %7 = arith.muli %c1_i32, %c128_i32_1 : i32
    %8 = tpu.assume_multiple %7, 128 : i32
    %c0_2 = arith.constant 0 : index
    %c0_3 = arith.constant 0 : index
    %9 = arith.index_cast %8 : i32 to index
    %10 = vector.load %arg1[%c0_2, %c0_3, %9] : memref<1x4x256xf32, #tpu.memory_space<vmem>>, vector<1x4x128xf32>
    %11 = vector.shape_cast %10 : vector<1x4x128xf32> to vector<4x128xf32>
    %12 = arith.addf %6, %11 : vector<4x128xf32>
    %c2_i32 = arith.constant 2 : i32
    %cst_4 = arith.constant dense<0.000000e+00> : vector<4xf32>
    %13 = vector.multi_reduction <add>, %12, %cst_4 [1] : vector<4x128xf32> to vector<4xf32>
    %14 = vector.shape_cast %13 : vector<4xf32> to vector<4x1xf32>
    %cst_5 = arith.constant 3.906250e-03 : f32
    %15 = vector.broadcast %cst_5 : f32 to vector<4x1xf32>
    %16 = arith.mulf %14, %15 : vector<4x1xf32>
    %c0_6 = arith.constant 0 : index
    %c0_7 = arith.constant 0 : index
    %17 = vector.load %arg2[%c0_6, %c0_7] : memref<4x2xf32, #tpu.memory_space<vmem>>, vector<4x2xf32>
    %18 = vector.broadcast %16 : vector<4x1xf32> to vector<4x2xf32>
    %19 = arith.mulf %17, %18 : vector<4x2xf32>
    %cst_8 = arith.constant dense<0.000000e+00> : vector<2xf32>
    %20 = vector.multi_reduction <add>, %19, %cst_8 [0] : vector<4x2xf32> to vector<2xf32>
    %21 = vector.shape_cast %20 : vector<2xf32> to vector<1x2xf32>
    %c0_9 = arith.constant 0 : index
    %c0_10 = arith.constant 0 : index
    %22 = vector.load %arg3[%c0_9, %c0_10] : memref<1x2xf32, #tpu.memory_space<vmem>>, vector<1x2xf32>
    %23 = arith.addf %21, %22 : vector<1x2xf32>
    %cst_11 = arith.constant 0.000000e+00 : f32
    %24 = vector.broadcast %cst_11 : f32 to vector<1x2xf32>
    %25 = arith.maximumf %23, %24 : vector<1x2xf32>
    %c0_12 = arith.constant 0 : index
    %c0_13 = arith.constant 0 : index
    %26 = vector.load %arg4[%c0_12, %c0_13] : memref<4x2xf32, #tpu.memory_space<vmem>>, vector<4x2xf32>
    %27 = vector.broadcast %25 : vector<1x2xf32> to vector<4x2xf32>
    %28 = arith.mulf %26, %27 : vector<4x2xf32>
    %cst_14 = arith.constant dense<0.000000e+00> : vector<4xf32>
    %29 = vector.multi_reduction <add>, %28, %cst_14 [1] : vector<4x2xf32> to vector<4xf32>
    %30 = vector.shape_cast %29 : vector<4xf32> to vector<4x1xf32>
    %c0_15 = arith.constant 0 : index
    %c0_16 = arith.constant 0 : index
    %31 = vector.load %arg5[%c0_15, %c0_16] : memref<4x1xf32, #tpu.memory_space<vmem>>, vector<4x1xf32>
    %32 = arith.addf %30, %31 : vector<4x1xf32>
    %cst_17 = arith.constant 0.000000e+00 : f32
    %33 = vector.broadcast %cst_17 : f32 to vector<4x1xf32>
    %34 = arith.cmpf oge, %32, %33 : vector<4x1xf32>
    %cst_18 = arith.constant 0.000000e+00 : f32
    %35 = vector.broadcast %cst_18 : f32 to vector<4x1xf32>
    %36 = arith.subf %35, %32 : vector<4x1xf32>
    %37 = arith.select %34, %36, %32 : vector<4x1xi1>, vector<4x1xf32>
    %38 = math.exp %37 : vector<4x1xf32>
    %cst_19 = arith.constant 1.000000e+00 : f32
    %39 = vector.broadcast %cst_19 : f32 to vector<4x1xf32>
    %40 = arith.addf %39, %38 : vector<4x1xf32>
    %cst_20 = arith.constant 1.000000e+00 : f32
    %41 = vector.broadcast %cst_20 : f32 to vector<4x1xf32>
    %42 = arith.divf %41, %40 : vector<4x1xf32>
    %43 = arith.mulf %38, %42 : vector<4x1xf32>
    %44 = arith.select %34, %42, %43 : vector<4x1xi1>, vector<4x1xf32>
    %c0_21 = arith.constant 0 : index
    %c0_22 = arith.constant 0 : index
    %c0_23 = arith.constant 0 : index
    %45 = vector.load %arg1[%c0_21, %c0_22, %c0_23] : memref<1x4x256xf32, #tpu.memory_space<vmem>>, vector<1x4x256xf32>
    %46 = vector.shape_cast %44 : vector<4x1xf32> to vector<1x4x1xf32>
    %47 = vector.broadcast %46 : vector<1x4x1xf32> to vector<1x4x256xf32>
    %48 = arith.mulf %45, %47 : vector<1x4x256xf32>
    %c0_24 = arith.constant 0 : index
    %c0_25 = arith.constant 0 : index
    %c0_26 = arith.constant 0 : index
    %49 = vector.load %arg6[%c0_24, %c0_25, %c0_26] : memref<1x4x256xf32, #tpu.memory_space<vmem>>, vector<1x4x256xf32>
    tpu.vector_store %arg6[%c0_24, %c0_25, %c0_26], %48 {strides = array<i32>} : memref<1x4x256xf32, #tpu.memory_space<vmem>>, vector<1x4x256xf32>,
    return
  }
  func.func @transform_0(%arg0: i32) -> (i32, i32, i32) {
    %c0_i32 = arith.constant 0 : i32
    %c0_i32_0 = arith.constant 0 : i32
    %c0_i32_1 = arith.constant 0 : i32
    return %arg0, %c0_i32, %c0_i32_0 : i32, i32, i32
  }
  func.func @transform_1(%arg0: i32) -> (i32, i32) {
    %c0_i32 = arith.constant 0 : i32
    %c0_i32_0 = arith.constant 0 : i32
    %c0_i32_1 = arith.constant 0 : i32
    return %c0_i32, %c0_i32_0 : i32, i32
  }
  func.func @transform_2(%arg0: i32) -> (i32, i32) {
    %c0_i32 = arith.constant 0 : i32
    %c0_i32_0 = arith.constant 0 : i32
    %c0_i32_1 = arith.constant 0 : i32
    return %c0_i32, %c0_i32_0 : i32, i32
  }
  func.func @transform_3(%arg0: i32) -> (i32, i32) {
    %c0_i32 = arith.constant 0 : i32
    %c0_i32_0 = arith.constant 0 : i32
    %c0_i32_1 = arith.constant 0 : i32
    return %c0_i32, %c0_i32_0 : i32, i32
  }
  func.func @transform_4(%arg0: i32) -> (i32, i32) {
    %c0_i32 = arith.constant 0 : i32
    %c0_i32_0 = arith.constant 0 : i32
    %c0_i32_1 = arith.constant 0 : i32
    return %c0_i32, %c0_i32_0 : i32, i32
  }
  func.func @transform_5(%arg0: i32) -> (i32, i32, i32) {
    %c0_i32 = arith.constant 0 : i32
    %c0_i32_0 = arith.constant 0 : i32
    %c0_i32_1 = arith.constant 0 : i32
    return %arg0, %c0_i32, %c0_i32_0 : i32, i32, i32
  }
}

</mosaic_0001>

<bundles_post_ra>
// kernel: tpu_custom_call.1
= control target key start
LH: loop header
LB: loop body
LE: loop exit
PB: predicated region body
PF: predicated region fallthrough
CT: control target
= control target key end

     0   :  { %10 = vsyncpa [#allocation3], 0  ;;  %s619_s0 = inlined_call_operand.vmem [shape: f32[2,4,256], index: 0, kind: input, shape index: {}]   ;;  %s620_s1 = inlined_call_operand.vmem [shape: f32[4,2], index: 1, kind: input, shape index: {}]   ;;  %s621_s2 = inlined_call_operand.vmem [shape: f32[1,2], index: 2, kind: input, shape index: {}]   ;;  %s622_s3 = inlined_call_operand.vmem [shape: f32[4,2], index: 3, kind: input, shape index: {}]   ;;  %s623_s4 = inlined_call_operand.vmem [shape: f32[4,1], index: 4, kind: input, shape index: {}]   ;;  %s624_s5 = inlined_call_operand.hbm [shape: f32[2,4,256], index: 5, kind: output, shape index: {}]  }
   0x1   :  { %12 = vsyncpa [#allocation3 + $0x1], 0  ;;  %s513_s18 = smov 0   ;;  %s515_s19 = smov 0  }
   0x2   :  { %s517_s20 = smov 0   ;;  %s519_s21 = smov 0  }
   0x3 LB: > { %s534_s22 = sadd.s32 4294967295, %s478_s21   ;;  %s356_s23 = sadd.s32 4294967294, %s478_s21   ;;  %s478_s21 = sphi %s519_s21, %s630_s21   ;;  %s474_s20 = sphi %s517_s20, %s629_s20   ;;  %s470_s19 = sphi %s515_s19, %s628_s19   ;;  %s466_s18 = sphi %s513_s18, %s627_s18  }
   0x4   : > { %s538_s24 = sadd.s32 1, %s478_s21   ;;  %s135_s25 = sadd.s32 1, %s474_s20 }
   0x5   : > { %s132_s26 = ssub.s32 %s478_s21, %s538_s24  ;;  %p145_p0 = scmp.ne.s32.totalorder %s474_s20, %s470_s19 }
   0x6   : > { %p133_p1 = scmp.eq.s32.totalorder %s132_s26, 0  ;;  %p146_p2 = scmp.eq.s32.totalorder %s534_s22, 1 }
   0x7   : > { %p151_p3 = scmp.ne.s32.totalorder %s470_s19, %s466_s18  ;;  %p152_p4 = scmp.eq.s32.totalorder %s356_s23, 1 }
   0x8   : > { %s549_s27 = scalar_select %p133_p1, %s474_s20, %s135_s25  }
   0x9   : > { %p551_p5 = por %p146_p2, %p145_p0  ;;  %p555_p6 = por %p152_p4, %p151_p3 }
   0xa   : > { %p359_p7 = scmp.ge.s32.totalorder %s478_s21, 1  ;;  %p190_p8 = scmp.lt.s32.totalorder %s478_s21, 3 }
   0xc   : > { %p191_p9 = pnand %p359_p7, %p190_p8 }
   0xd   : > { %p218_p10 = scmp.lt.s32.totalorder (!%p191_p9), %s534_s22, 1  ;;  %s215_s23 = sand.u32 (!%p191_p9), 1, %s470_s19  }
   0xe   : > { %194 = sbr.rel (%p191_p9) target bundleno = 510 (0x1fe), region = 40  ;;  %s360_s25 = sshll.u32 (!%p191_p9), %s215_s23, 3 }
   0xf   : > { %s370_s26 = sshll.u32 (!%p191_p9), %s534_s22, 7  ;;  %s283_s11 = scalar_lea.sflag (!%p191_p9), [#allocation3], %s215_s23 }
  0x10   : > { %s295_s10 = scalar_lea.hbm (!%p191_p9), %s624_s5, %s370_s26  ;;  %s482_s13 = smov (!%p191_p9), [#allocation2]  }
  0x13   : > { %s219_s30 = scalar_select %p218_p10, %s534_s22, 1  ;;  %vm228_vm0 = vcmask 1043456   ;;  %v233_v4 = vld [vmem:[%s620_s1] sm:$0xf]  ;;  %vm235_vm1 = vcmask 11264   ;;  %v247_v12 = vlaneseq  ;;  %v480_v25 = vmov 0  }
  0x14   : > { %v243_v16 = vld [vmem:[%s621_s2] sm:$0x1]  ;;  %412 = vset.pattern.permute.xlu1 %v480_v25  ;;  %413 = vset.pattern.permute.xlu0 %v480_v25  ;;  %v481_v37 = vmov 839922192  }
  0x15   : > { %s369_s6 = sshll.u32 %s219_s30, 3  ;;  %v248_v15 = vshrl.u32 %v247_v12, 7  ;;  %v246_v21 = vld [vmem:[%s622_s3] sm:$0xf]  ;;  %v273_v38 = vunpack.c.l.s4 %v481_v37  ;;  %s217_s30 = scalar_lea.vmem [#allocation2], %s360_s25 }
  0x16   : > { %s566_s9 = scalar_lea.vmem %s619_s0, %s369_s6  ;;  %v255_v26 = vld [vmem:[%s623_s4] sm:$0xf]  ;;  %s297_s6 = sshll.u32 %s217_s30, 4  ;;  %s298_s6 = int_to_ptr.vmem [resolvable:$true] %s297_s6 }
  0x17   : > { %v223_v0 = vld [vmem:[%s566_s9] sm:$0xf]  ;;  %v363_v1 = vld [vmem:[%s566_s9 + $0x4] sm:$0xf]  ;;  %v249_v19 = vsub.s32 0, %v248_v15  ;;  %v274_v39 = vunpack.c.0.s8 %v273_v38  ;;  %s418_s12 = scalar_lea.vmem %s298_s6, 128 }
  0x18   : > { %v227_v2 = vadd.f32 %v363_v1, %v223_v0  ;;  %v267_v41 = vld [vmem:[%s566_s9] sm:$0xff]  ;;  %p419_p11 = scmp.ne.s32.totalorder %s298_s6, %s418_s12  ;;  %s422_s9 = sshll.u32 %s482_s13, 4  ;;  %s423_s9 = int_to_ptr.vmem [resolvable:$false] %s422_s9 }
  0x19   : > { %v277_v40 = vsub.s32 %v274_v39, %v248_v15  ;;  %s424_s22 = scalar_lea.vmem %s423_s9, 256  ;;  %p425_p0 = scmp.lt.s32.totalorder %s298_s6, %s423_s9 }
  0x1a   : > { %v229_v3 = vsel %vm228_vm0, %v227_v2, 0.0  ;;  %p420_p12 = pnand %p419_p11, %p551_p5  ;;  %p426_p1 = scmp.lt.s32.totalorder %s424_s22, %s418_s12 }
  0x1b   : > { %230 = vadd.xlane.f32.xlu0 %v229_v3 }
  0x1c   : > { %p421_p13 = pneg %p420_p12  ;;  %p427_p2 = por %p426_p1, %p425_p0 }
  0x1e   : > { %p428_p3 = pnand %p427_p2, %p421_p13 }
  0xa4   : > { %v231_v5 = vpop.xlane.xlu0 %230 }
  0xa5   : > { %v232_v6 = vmul.f32 0.00390625, %v231_v5 }
  0xa7   : > { %v234_v7 = vmul.f32 %v233_v4, %v232_v6 }
  0xa9   : > { %v236_v8 = vsel %vm235_vm1, %v234_v7, 0.0 }
  0xaa   : > { %v237_v9 = vrot.slane %v236_v8, 4 }
  0xac   : > { %v238_v10 = vadd.f32 %v237_v9, %v236_v8 }
  0xae   : > { %v239_v11 = vrot.slane %v238_v10, 2 }
  0xb0   : > { %v240_v13 = vadd.f32 %v239_v11, %v238_v10 }
  0xb2   : > { %v241_v14 = vrot.slane %v240_v13, 1 }
  0xb4   : > { %v242_v17 = vadd.f32 %v241_v14, %v240_v13 }
  0xb6   : > { %v244_v18 = vadd.f32 %v243_v16, %v242_v17 }
  0xb8   : > { %v245_v20 = vmax.f32 %v244_v18, 0.0 }
  0xba   : > { %v250_v22 = vrot.slane %v245_v20, %v249_v19 }
  0xbc   : > { %v251_v23 = vmul.f32 %v250_v22, %v246_v21 }
  0xbe   : > { %v252_v24 = vsel %vm235_vm1, %v251_v23, 0.0 }
  0xbf   : > { %253 = vadd.xlane.f32.xlu0 %v252_v24 }
 0x148   : > { %v254_v27 = vpop.xlane.xlu0 %253 }
 0x149   : > { %v256_v28 = vadd.f32 %v255_v26, %v254_v27 }
 0x14b   : > { %v258_v29 = vsub.f32 0.0, %v256_v28  ;;  %vm257_vm2 = vcmp.ge.f32.partialorder %v256_v28, 0.0 }
 0x14d   : > { %v259_v30 = vsel %vm257_vm2, %v258_v29, %v256_v28 }
 0x14e   : > { %v260_v31 = vmul.f32 1.442695, %v259_v30 }
 0x150   : > { %414 = vpow2.f32 %v260_v31 }
 0x15d   : > { %v415_v32 = vpop.eup %414 }
 0x15e   : > { %v262_v33 = vadd.f32 1.0, %v415_v32 }
 0x160   : > { %416 = vrcp.f32 %v262_v33 }
 0x16d   : > { %v417_v34 = vpop.eup %416 }
 0x16e   : > { %v265_v35 = vmul.f32 %v417_v34, %v415_v32 }
 0x170   : > { %v266_v36 = vsel %vm257_vm2, %v417_v34, %v265_v35 }
 0x171   : > { %270 = vperm.xlu1 %412, %v266_v36  }
 0x1ec   : > { %v271_v42 = vpop.permute.xlu1 %270 }
 0x1ed   : > { %v278_v43 = vrot.slane %v271_v42, %v277_v40 }
 0x1ef   : > { %v280_v44 = vmul.f32 %v278_v43, %v267_v41 }
 0x1f1   : > { %281 = vst [vmem:[%s217_s30] sm:$0xff] %v280_v44 }
 0x1f2   : > { %431 = shalt.err (!%p428_p3)
}
 0x1f3   : > { %s432_s14 = scalar_lea.hbm %s295_s10, 128  ;;  %s436_s17 = scalar_lea.hbm %s624_s5, 256 }
 0x1f4   : > { %p433_p4 = scmp.ne.s32.totalorder %s295_s10, %s432_s14  ;;  %p437_p9 = scmp.lt.s32.totalorder %s295_s10, %s624_s5 }
 0x1f5   : > { %p438_p10 = scmp.lt.s32.totalorder %s436_s17, %s432_s14 }
 0x1f6   : > { %p434_p7 = pnand %p433_p4, %p551_p5 }
 0x1f7   : > { %p439_p11 = por %p438_p10, %p437_p9 }
 0x1f8   : > { %p435_p8 = pneg %p434_p7 }
 0x1fa   : > { %p440_p12 = pnand %p439_p11, %p435_p8 }
 0x1fc   : > { %443 = shalt.err (!%p440_p12)
}
 0x1fd   : > { %371 = dma.vmem_to_hbm [thread:$0]  (%p551_p5), %s298_s6, 128, %s295_s10, %s283_s11  }
 0x1fe PF: > { %p377_p13 = scmp.ge.s32.totalorder %s478_s21, 2  ;;  %s309_s26 = sand.u32 1, %s466_s18  }
 0x1ff   : > { %s310_s30 = scalar_lea.sflag [#allocation3], %s309_s26 }
 0x200   : > { %p374_p0 = pnand %p377_p13, %p555_p6 }
 0x202   : > { %p375_p1 = pneg %p374_p0 }
 0x204   : > { %461 = dma.done.wait (%p375_p1), %s310_s30, 128  }
 0x205   : > { %463 = vsyncadd (%p375_p1), %s310_s30, 4294967168  ;;  %p15_p2 = scmp.ge.s32.totalorder %s538_s24, 4   ;;  %s627_s18 = smov %s470_s19 }
 0x206   : > { %s628_s19 = smov %s474_s20  ;;  %s629_s20 = smov %s549_s27 }
 0x207   : > { %s630_s21 = smov %s538_s24  ;;  %17 = sbr.rel (!%p15_p2) target bundleno = 3 (0x3), region = 76 }
 0x20c   :  { %315 = vsyncpa [#allocation3], 1 }
 0x20d   :  { %317 = vsyncpa [#allocation3 + $0x1], 1 }

</bundles_post_ra>
